<compile_context>
chip_gen: v7x
topology: tpu7x:2x2x1
jax: 0.10.0
libtpu: 0.0.40
codegen_flags: <defaults>
</compile_context>

<pallas_src>
import jax
import jax.numpy as jnp
from jax import lax
from jax.experimental import pallas as pl
from jax.experimental.pallas import tpu as pltpu

# Backbone geometry (synthesized backbone, see header).
IN_CH = 3
CONV_F = 16                 # conv output channels
KH = KW = 3
STRIDE = 2
PAD = 1
CROP_LO, CROP_HI = 8, 104   # hard-coded crop from the PyTorch module
OH, OW = 48, 8              # conv output spatial dims for the 96x16 crop
FEAT = 32                   # final embedding size
K_PATCH = IN_CH * KH * KW   # 27
LANES = OW * CONV_F         # 128: one image row of conv outputs per sublane row
GROUP_K = OW * K_PATCH      # 216: im2col K for one packed row
N_CHUNK = OH // 8           # 6 chunks of 8 sublane rows
CHUNK_N = 8 * FEAT          # 256 columns per chunk of the fused-linear weight


# ---------------------------------------------------------------------------
# Fused kernel: one grid step == one sample; everything stays in VMEM/vregs.
# ---------------------------------------------------------------------------
def _fused_backbone_kernel(lhs_ref, bigb_ref, bias_ref, alpha_ref,
                           wt_ref, mask_ref, sel_ref, linb_ref, out_ref):
    # ---- Conv2d(3->16, k3, s2, p1) + bias + PReLU as ONE matmul ------------
    # lhs:  (48, 216)  im2col patches for one sample, 8 width positions per row
    # bigb: (216, 128) block-diagonal copy of the 27x16 conv weight
    conv = jnp.dot(lhs_ref[0], bigb_ref[...],
                   preferred_element_type=jnp.float32)            # (48,128) f32
    conv = conv + bias_ref[...]                                   # + (1,128)
    conv = jnp.where(conv >= 0.0, conv, alpha_ref[...] * conv)    # PReLU (f32)

    # ---- Fused Linear(6144 -> 32), chunked over 8-row sublane groups -------
    # Flat feature index of conv[q, j] is q*128 + j; wt3[c, j, r*32+o] holds the
    # Linear weight W[(c*8+r)*128 + j, o].  Per chunk c:
    #   g_c[r, r'*32+o] = sum_j conv[c*8+r, j] * W[(c*8+r')*128+j, o]
    # Only the r == r' blocks are needed; the block-diag mask is chunk-
    # independent, so accumulate unmasked and mask once at the end.
    acc = None
    for c in range(N_CHUNK):                                      # unrolled (6)
        blk = conv[c * 8:(c + 1) * 8, :].astype(jnp.bfloat16)     # (8,128) bf16
        g = jnp.dot(blk, wt_ref[c],
                    preferred_element_type=jnp.float32)           # (8,256) f32
        acc = g if acc is None else acc + g
    acc = acc * mask_ref[...]                                     # block-diag keep

    # Fold the 8 lane-chunks of 32 down to 32 with a tiny 0/1 selection matmul
    # (bf16; sel is exactly 0/1 so this is exact w.r.t. sel).
    part = jnp.dot(acc.astype(jnp.bfloat16), sel_ref[...],
                   preferred_element_type=jnp.float32)            # (8, 32) f32
    pred = jnp.sum(part, axis=0, keepdims=True) + linb_ref[...]   # (1, 32) f32

    out_ref[0] = pred                                             # (1,1,32) block


def _fused_backbone(lhs, prep):
    n = lhs.shape[0]
    out = pl.pallas_call(
        _fused_backbone_kernel,
        out_shape=jax.ShapeDtypeStruct((n, 1, FEAT), jnp.float32),
        grid=(n,),
        in_specs=[
            pl.BlockSpec((1, OH, GROUP_K), lambda i: (i, 0, 0)),        # per-sample patches
            pl.BlockSpec((GROUP_K, LANES), lambda i: (0, 0)),           # resident conv weight
            pl.BlockSpec((1, LANES), lambda i: (0, 0)),                 # resident bias
            pl.BlockSpec((1, LANES), lambda i: (0, 0)),                 # resident PReLU alpha
            pl.BlockSpec((N_CHUNK, LANES, CHUNK_N), lambda i: (0, 0, 0)),  # resident linear weight
            pl.BlockSpec((8, CHUNK_N), lambda i: (0, 0)),               # resident block-diag mask
            pl.BlockSpec((CHUNK_N, FEAT), lambda i: (0, 0)),            # resident fold selector
            pl.BlockSpec((1, FEAT), lambda i: (0, 0)),                  # resident linear bias
        ],
        out_specs=pl.BlockSpec((1, 1, FEAT), lambda i: (i, 0, 0)),
        compiler_params=pltpu.CompilerParams(
            dimension_semantics=("parallel",)),   # 2 parallel steps -> both v7x TCs
    )(lhs, prep["bigb"], prep["bias128"], prep["alpha128"],
      prep["wt3"], prep["mask"], prep["sel"], prep["lin_b"])
    return out.reshape(n, FEAT)


# ---------------------------------------------------------------------------
# FaceModel forward: pred = backbone(data[:, :, 8:104]); data_clip is ignored.
# ---------------------------------------------------------------------------
def face_model_forward(prep, data, data_clip):
    del data_clip                                   # unused, exactly like PyTorch
    x = data[:, :, CROP_LO:CROP_HI]                 # (N, 3, 96, 16)
    n = x.shape[0]
    # Tiny (~36 KiB) NCHW->NHWC transpose of the cropped input so the im2col
    # output is already (N, 48, 8, 27) and the reshape to (N,48,216) is free
    # (no big patches relayout on the host side).
    x_nhwc = jnp.transpose(x, (0, 2, 3, 1))         # (N, 96, 16, 3)
    patches = lax.conv_general_dilated_patches(
        x_nhwc, (KH, KW), (STRIDE, STRIDE), ((PAD, PAD), (PAD, PAD)),
        dimension_numbers=("NHWC", "HWIO", "NHWC"))  # (N, 48, 8, 27), feat=(c,kh,kw)
    lhs = patches.reshape(n, OH, GROUP_K).astype(jnp.bfloat16)  # bf16 MXU feed
    return _fused_backbone(lhs, prep)


# ---------------------------------------------------------------------------
# Parameters (raw PyTorch layout) and the one-time re-layout for the kernel.
# ---------------------------------------------------------------------------
def init_params(key):
    k1, k2, k3, k4 = jax.random.split(key, 4)
    flat_in = CONV_F * OH * OW                      # 6144, NCHW flatten
    return {
        "conv_w": jax.random.normal(k1, (CONV_F, IN_CH, KH, KW), jnp.float32) * 0.05,
        "conv_b": jax.random.normal(k2, (CONV_F,), jnp.float32) * 0.05,
        "prelu_a": jnp.full((CONV_F,), 0.25, jnp.float32),     # nn.PReLU init
        "lin_w": jax.random.normal(k3, (FEAT, flat_in), jnp.float32) * 0.02,
        "lin_b": jax.random.normal(k4, (FEAT,), jnp.float32) * 0.02,
    }


def prepare_params(params):
    """One-time weight re-layout for the fused kernel (no per-call cost)."""
    conv_mat = params["conv_w"].reshape(CONV_F, K_PATCH).T            # (27, 16)
    # Block-diagonal copy so 8 conv output positions share one matmul row.
    bigb = jnp.kron(jnp.eye(OW, dtype=jnp.float32), conv_mat)         # (216, 128)
    bias128 = jnp.tile(params["conv_b"], OW).reshape(1, LANES)
    alpha128 = jnp.tile(params["prelu_a"], OW).reshape(1, LANES)

    # lin_w is laid out for the NCHW flatten (f*384 + h*8 + w).  Permute once to
    # the kernel's (h, w, f) activation order -> W_hwf[(q*128 + j), o] with
    # q = h, j = w*16 + f.
    w2 = params["lin_w"].reshape(FEAT, CONV_F, OH, OW)                # (o, f, h, w)
    w_hwf = w2.transpose(2, 3, 1, 0).reshape(OH * LANES, FEAT)        # (6144, 32)
    # Chunked layout: wt3[c, j, r*32+o] = W_hwf[(c*8+r)*128 + j, o].
    wt3 = (w_hwf.reshape(N_CHUNK, 8, LANES, FEAT)
           .transpose(0, 2, 1, 3)
           .reshape(N_CHUNK, LANES, CHUNK_N))                         # (6,128,256)

    # Constant block-diag mask and fold selector (hoisted out of the kernel).
    r_idx = jnp.arange(8, dtype=jnp.int32)[:, None]
    col_idx = jnp.arange(CHUNK_N, dtype=jnp.int32)[None, :]
    mask = (col_idx // FEAT == r_idx).astype(jnp.float32)             # (8, 256)
    sel = (jnp.arange(CHUNK_N, dtype=jnp.int32)[:, None] % FEAT ==
           jnp.arange(FEAT, dtype=jnp.int32)[None, :]
           ).astype(jnp.bfloat16)                                     # (256, 32)

    return {
        "bigb": bigb.astype(jnp.bfloat16),
        "bias128": bias128,
        "alpha128": alpha128,
        "wt3": wt3.astype(jnp.bfloat16),
        "mask": mask,
        "sel": sel,
        "lin_b": params["lin_b"].reshape(1, FEAT),
    }


# Pure-JAX f32 reference (no Pallas) for the correctness check.
def reference_forward(params, data):
    x = data[:, :, CROP_LO:CROP_HI]
    y = lax.conv_general_dilated(
        x, params["conv_w"], (STRIDE, STRIDE), ((PAD, PAD), (PAD, PAD)),
        dimension_numbers=("NCHW", "OIHW", "NCHW"))
    y = y + params["conv_b"][None, :, None, None]
    a = params["prelu_a"][None, :, None, None]
    y = jnp.where(y >= 0, y, a * y)
    flat = y.reshape(y.shape[0], -1)                # NCHW flatten, like torch .view
    return flat @ params["lin_w"].T + params["lin_b"][None]


if __name__ == "__main__":
    key = jax.random.PRNGKey(0)
    kd, kc, kp = jax.random.split(key, 3)

    # data: (N=2, C=3, H=112, W=16); the module hard-codes the 8:104 crop -> H=96.
    data = jax.random.normal(kd, (2, 3, 112, 16), jnp.float32)
    data_clip = jax.random.normal(kc, (2, 3, 8, 8), jnp.float32)   # unused
    params = init_params(kp)
    prep = prepare_params(params)                   # one-time weight re-layout

    fwd = jax.jit(face_model_forward)
    pred = jax.block_until_ready(fwd(prep, data, data_clip))

    assert pred.shape == (2, FEAT), pred.shape
    ref = reference_forward(params, data)
    err = float(jnp.max(jnp.abs(pred - ref)))
    # bf16 MXU inputs (f32 accumulation): tolerance loosened vs. a pure-f32 path.
    assert err < 2e-2, f"max abs error {err}"

    print("KERNEL_OK")
</pallas_src>

<mosaic_0001>
module attributes {stable_mosaic.version = 11 : i64} {
  func.func @_fused_backbone_kernel(%arg0: i32, %arg1: memref<1x48x216xbf16, #tpu.memory_space<vmem>>, %arg2: memref<216x128xbf16, #tpu.memory_space<vmem>>, %arg3: memref<1x128xf32, #tpu.memory_space<vmem>>, %arg4: memref<1x128xf32, #tpu.memory_space<vmem>>, %arg5: memref<6x128x256xbf16, #tpu.memory_space<vmem>>, %arg6: memref<8x256xf32, #tpu.memory_space<vmem>>, %arg7: memref<256x32xbf16, #tpu.memory_space<vmem>>, %arg8: memref<1x32xf32, #tpu.memory_space<vmem>>, %arg9: memref<1x1x32xf32, #tpu.memory_space<vmem>>) attributes {dimension_semantics = [#tpu.dimension_semantics<parallel>], iteration_bounds = array<i64: 2>, scalar_prefetch = 0 : i64, scratch_operands = 0 : i64, tpu.core_type = #tpu.core_type<tc>, window_params = [{transform_indices = @transform_0, window_bounds = array<i64: 1, 48, 216>}, {pipeline_mode = #tpu.pipeline_mode<synchronous>, transform_indices = @transform_1, window_bounds = array<i64: 216, 128>}, {pipeline_mode = #tpu.pipeline_mode<synchronous>, transform_indices = @transform_2, window_bounds = array<i64: 1, 128>}, {pipeline_mode = #tpu.pipeline_mode<synchronous>, transform_indices = @transform_3, window_bounds = array<i64: 1, 128>}, {pipeline_mode = #tpu.pipeline_mode<synchronous>, transform_indices = @transform_4, window_bounds = array<i64: 6, 128, 256>}, {pipeline_mode = #tpu.pipeline_mode<synchronous>, transform_indices = @transform_5, window_bounds = array<i64: 8, 256>}, {pipeline_mode = #tpu.pipeline_mode<synchronous>, transform_indices = @transform_6, window_bounds = array<i64: 256, 32>}, {pipeline_mode = #tpu.pipeline_mode<synchronous>, transform_indices = @transform_7, window_bounds = array<i64: 1, 32>}, {transform_indices = @transform_8, window_bounds = array<i64: 1, 1, 32>}]} {
    %c0 = arith.constant 0 : index
    %c0_0 = arith.constant 0 : index
    %c0_1 = arith.constant 0 : index
    %0 = vector.load %arg1[%c0, %c0_0, %c0_1] : memref<1x48x216xbf16, #tpu.memory_space<vmem>>, vector<1x48x216xbf16>
    %1 = vector.shape_cast %0 : vector<1x48x216xbf16> to vector<48x216xbf16>
    %c0_2 = arith.constant 0 : index
    %c0_3 = arith.constant 0 : index
    %2 = vector.load %arg2[%c0_2, %c0_3] : memref<216x128xbf16, #tpu.memory_space<vmem>>, vector<216x128xbf16>
    %cst = arith.constant dense<0.000000e+00> : vector<48x128xf32>
    %3 = tpu.matmul %1, %2, %cst {dimension_numbers = #tpu.dot_dimension_numbers<[1], [0], [0], [1], [0, 0, 1, 1], [], []>} : vector<48x216xbf16>, vector<216x128xbf16>, vector<48x128xf32> -> vector<48x128xf32>
    %c0_4 = arith.constant 0 : index
    %c0_5 = arith.constant 0 : index
    %4 = vector.load %arg3[%c0_4, %c0_5] : memref<1x128xf32, #tpu.memory_space<vmem>>, vector<1x128xf32>
    %5 = vector.broadcast %4 : vector<1x128xf32> to vector<48x128xf32>
    %6 = arith.addf %3, %5 : vector<48x128xf32>
    %cst_6 = arith.constant 0.000000e+00 : f32
    %7 = vector.broadcast %cst_6 : f32 to vector<48x128xf32>
    %8 = arith.cmpf oge, %6, %7 : vector<48x128xf32>
    %c0_7 = arith.constant 0 : index
    %c0_8 = arith.constant 0 : index
    %9 = vector.load %arg4[%c0_7, %c0_8] : memref<1x128xf32, #tpu.memory_space<vmem>>, vector<1x128xf32>
    %10 = vector.broadcast %9 : vector<1x128xf32> to vector<48x128xf32>
    %11 = arith.mulf %10, %6 : vector<48x128xf32>
    %12 = arith.select %8, %6, %11 : vector<48x128xi1>, vector<48x128xf32>
    %13 = vector.extract_strided_slice %12 {offsets = [0, 0], sizes = [8, 128], strides = [1, 1]} : vector<48x128xf32> to vector<8x128xf32>
    %14 = arith.truncf %13 : vector<8x128xf32> to vector<8x128xbf16>
    %c0_9 = arith.constant 0 : index
    %c0_10 = arith.constant 0 : index
    %c0_11 = arith.constant 0 : index
    %15 = vector.load %arg5[%c0_9, %c0_10, %c0_11] : memref<6x128x256xbf16, #tpu.memory_space<vmem>>, vector<1x128x256xbf16>
    %16 = vector.shape_cast %15 : vector<1x128x256xbf16> to vector<128x256xbf16>
    %cst_12 = arith.constant dense<0.000000e+00> : vector<8x256xf32>
    %17 = tpu.matmul %14, %16, %cst_12 {dimension_numbers = #tpu.dot_dimension_numbers<[1], [0], [0], [1], [0, 0, 1, 1], [], []>} : vector<8x128xbf16>, vector<128x256xbf16>, vector<8x256xf32> -> vector<8x256xf32>
    %18 = vector.extract_strided_slice %12 {offsets = [8, 0], sizes = [8, 128], strides = [1, 1]} : vector<48x128xf32> to vector<8x128xf32>
    %19 = arith.truncf %18 : vector<8x128xf32> to vector<8x128xbf16>
    %c1 = arith.constant 1 : index
    %c0_13 = arith.constant 0 : index
    %c0_14 = arith.constant 0 : index
    %20 = vector.load %arg5[%c1, %c0_13, %c0_14] : memref<6x128x256xbf16, #tpu.memory_space<vmem>>, vector<1x128x256xbf16>
    %21 = vector.shape_cast %20 : vector<1x128x256xbf16> to vector<128x256xbf16>
    %cst_15 = arith.constant dense<0.000000e+00> : vector<8x256xf32>
    %22 = tpu.matmul %19, %21, %cst_15 {dimension_numbers = #tpu.dot_dimension_numbers<[1], [0], [0], [1], [0, 0, 1, 1], [], []>} : vector<8x128xbf16>, vector<128x256xbf16>, vector<8x256xf32> -> vector<8x256xf32>
    %23 = arith.addf %17, %22 : vector<8x256xf32>
    %24 = vector.extract_strided_slice %12 {offsets = [16, 0], sizes = [8, 128], strides = [1, 1]} : vector<48x128xf32> to vector<8x128xf32>
    %25 = arith.truncf %24 : vector<8x128xf32> to vector<8x128xbf16>
    %c2 = arith.constant 2 : index
    %c0_16 = arith.constant 0 : index
    %c0_17 = arith.constant 0 : index
    %26 = vector.load %arg5[%c2, %c0_16, %c0_17] : memref<6x128x256xbf16, #tpu.memory_space<vmem>>, vector<1x128x256xbf16>
    %27 = vector.shape_cast %26 : vector<1x128x256xbf16> to vector<128x256xbf16>
    %cst_18 = arith.constant dense<0.000000e+00> : vector<8x256xf32>
    %28 = tpu.matmul %25, %27, %cst_18 {dimension_numbers = #tpu.dot_dimension_numbers<[1], [0], [0], [1], [0, 0, 1, 1], [], []>} : vector<8x128xbf16>, vector<128x256xbf16>, vector<8x256xf32> -> vector<8x256xf32>
    %29 = arith.addf %23, %28 : vector<8x256xf32>
    %30 = vector.extract_strided_slice %12 {offsets = [24, 0], sizes = [8, 128], strides = [1, 1]} : vector<48x128xf32> to vector<8x128xf32>
    %31 = arith.truncf %30 : vector<8x128xf32> to vector<8x128xbf16>
    %c3 = arith.constant 3 : index
    %c0_19 = arith.constant 0 : index
    %c0_20 = arith.constant 0 : index
    %32 = vector.load %arg5[%c3, %c0_19, %c0_20] : memref<6x128x256xbf16, #tpu.memory_space<vmem>>, vector<1x128x256xbf16>
    %33 = vector.shape_cast %32 : vector<1x128x256xbf16> to vector<128x256xbf16>
    %cst_21 = arith.constant dense<0.000000e+00> : vector<8x256xf32>
    %34 = tpu.matmul %31, %33, %cst_21 {dimension_numbers = #tpu.dot_dimension_numbers<[1], [0], [0], [1], [0, 0, 1, 1], [], []>} : vector<8x128xbf16>, vector<128x256xbf16>, vector<8x256xf32> -> vector<8x256xf32>
    %35 = arith.addf %29, %34 : vector<8x256xf32>
    %36 = vector.extract_strided_slice %12 {offsets = [32, 0], sizes = [8, 128], strides = [1, 1]} : vector<48x128xf32> to vector<8x128xf32>
    %37 = arith.truncf %36 : vector<8x128xf32> to vector<8x128xbf16>
    %c4 = arith.constant 4 : index
    %c0_22 = arith.constant 0 : index
    %c0_23 = arith.constant 0 : index
    %38 = vector.load %arg5[%c4, %c0_22, %c0_23] : memref<6x128x256xbf16, #tpu.memory_space<vmem>>, vector<1x128x256xbf16>
    %39 = vector.shape_cast %38 : vector<1x128x256xbf16> to vector<128x256xbf16>
    %cst_24 = arith.constant dense<0.000000e+00> : vector<8x256xf32>
    %40 = tpu.matmul %37, %39, %cst_24 {dimension_numbers = #tpu.dot_dimension_numbers<[1], [0], [0], [1], [0, 0, 1, 1], [], []>} : vector<8x128xbf16>, vector<128x256xbf16>, vector<8x256xf32> -> vector<8x256xf32>
    %41 = arith.addf %35, %40 : vector<8x256xf32>
    %42 = vector.extract_strided_slice %12 {offsets = [40, 0], sizes = [8, 128], strides = [1, 1]} : vector<48x128xf32> to vector<8x128xf32>
    %43 = arith.truncf %42 : vector<8x128xf32> to vector<8x128xbf16>
    %c5 = arith.constant 5 : index
    %c0_25 = arith.constant 0 : index
    %c0_26 = arith.constant 0 : index
    %44 = vector.load %arg5[%c5, %c0_25, %c0_26] : memref<6x128x256xbf16, #tpu.memory_space<vmem>>, vector<1x128x256xbf16>
    %45 = vector.shape_cast %44 : vector<1x128x256xbf16> to vector<128x256xbf16>
    %cst_27 = arith.constant dense<0.000000e+00> : vector<8x256xf32>
    %46 = tpu.matmul %43, %45, %cst_27 {dimension_numbers = #tpu.dot_dimension_numbers<[1], [0], [0], [1], [0, 0, 1, 1], [], []>} : vector<8x128xbf16>, vector<128x256xbf16>, vector<8x256xf32> -> vector<8x256xf32>
    %47 = arith.addf %41, %46 : vector<8x256xf32>
    %c0_28 = arith.constant 0 : index
    %c0_29 = arith.constant 0 : index
    %48 = vector.load %arg6[%c0_28, %c0_29] : memref<8x256xf32, #tpu.memory_space<vmem>>, vector<8x256xf32>
    %49 = arith.mulf %47, %48 : vector<8x256xf32>
    %50 = arith.truncf %49 : vector<8x256xf32> to vector<8x256xbf16>
    %c0_30 = arith.constant 0 : index
    %c0_31 = arith.constant 0 : index
    %51 = vector.load %arg7[%c0_30, %c0_31] : memref<256x32xbf16, #tpu.memory_space<vmem>>, vector<256x32xbf16>
    %cst_32 = arith.constant dense<0.000000e+00> : vector<8x32xf32>
    %52 = tpu.matmul %50, %51, %cst_32 {dimension_numbers = #tpu.dot_dimension_numbers<[1], [0], [0], [1], [0, 0, 1, 1], [], []>} : vector<8x256xbf16>, vector<256x32xbf16>, vector<8x32xf32> -> vector<8x32xf32>
    %cst_33 = arith.constant dense<0.000000e+00> : vector<32xf32>
    %53 = vector.multi_reduction <add>, %52, %cst_33 [0] : vector<8x32xf32> to vector<32xf32>
    %54 = vector.shape_cast %53 : vector<32xf32> to vector<1x32xf32>
    %c0_34 = arith.constant 0 : index
    %c0_35 = arith.constant 0 : index
    %55 = vector.load %arg8[%c0_34, %c0_35] : memref<1x32xf32, #tpu.memory_space<vmem>>, vector<1x32xf32>
    %56 = arith.addf %54, %55 : vector<1x32xf32>
    %c0_36 = arith.constant 0 : index
    %c0_37 = arith.constant 0 : index
    %c0_38 = arith.constant 0 : index
    %57 = vector.load %arg9[%c0_36, %c0_37, %c0_38] : memref<1x1x32xf32, #tpu.memory_space<vmem>>, vector<1x1x32xf32>
    %58 = vector.shape_cast %57 : vector<1x1x32xf32> to vector<1x32xf32>
    %59 = vector.shape_cast %56 : vector<1x32xf32> to vector<1x1x32xf32>
    tpu.vector_store %arg9[%c0_36, %c0_37, %c0_38], %59 {strides = array<i32>} : memref<1x1x32xf32, #tpu.memory_space<vmem>>, vector<1x1x32xf32>,
    return
  }
  func.func @transform_0(%arg0: i32) -> (i32, i32, i32) {
    %c0_i32 = arith.constant 0 : i32
    %c0_i32_0 = arith.constant 0 : i32
    %c0_i32_1 = arith.constant 0 : i32
    return %arg0, %c0_i32, %c0_i32_0 : i32, i32, i32
  }
  func.func @transform_1(%arg0: i32) -> (i32, i32) {
    %c0_i32 = arith.constant 0 : i32
    %c0_i32_0 = arith.constant 0 : i32
    %c0_i32_1 = arith.constant 0 : i32
    return %c0_i32, %c0_i32_0 : i32, i32
  }
  func.func @transform_2(%arg0: i32) -> (i32, i32) {
    %c0_i32 = arith.constant 0 : i32
    %c0_i32_0 = arith.constant 0 : i32
    %c0_i32_1 = arith.constant 0 : i32
    return %c0_i32, %c0_i32_0 : i32, i32
  }
  func.func @transform_3(%arg0: i32) -> (i32, i32) {
    %c0_i32 = arith.constant 0 : i32
    %c0_i32_0 = arith.constant 0 : i32
    %c0_i32_1 = arith.constant 0 : i32
    return %c0_i32, %c0_i32_0 : i32, i32
  }
  func.func @transform_4(%arg0: i32) -> (i32, i32, i32) {
    %c0_i32 = arith.constant 0 : i32
    %c0_i32_0 = arith.constant 0 : i32
    %c0_i32_1 = arith.constant 0 : i32
    %c0_i32_2 = arith.constant 0 : i32
    return %c0_i32, %c0_i32_0, %c0_i32_1 : i32, i32, i32
  }
  func.func @transform_5(%arg0: i32) -> (i32, i32) {
    %c0_i32 = arith.constant 0 : i32
    %c0_i32_0 = arith.constant 0 : i32
    %c0_i32_1 = arith.constant 0 : i32
    return %c0_i32, %c0_i32_0 : i32, i32
  }
  func.func @transform_6(%arg0: i32) -> (i32, i32) {
    %c0_i32 = arith.constant 0 : i32
    %c0_i32_0 = arith.constant 0 : i32
    %c0_i32_1 = arith.constant 0 : i32
    return %c0_i32, %c0_i32_0 : i32, i32
  }
  func.func @transform_7(%arg0: i32) -> (i32, i32) {
    %c0_i32 = arith.constant 0 : i32
    %c0_i32_0 = arith.constant 0 : i32
    %c0_i32_1 = arith.constant 0 : i32
    return %c0_i32, %c0_i32_0 : i32, i32
  }
  func.func @transform_8(%arg0: i32) -> (i32, i32, i32) {
    %c0_i32 = arith.constant 0 : i32
    %c0_i32_0 = arith.constant 0 : i32
    %c0_i32_1 = arith.constant 0 : i32
    return %arg0, %c0_i32, %c0_i32_0 : i32, i32, i32
  }
}

</mosaic_0001>

<bundles_post_ra>
// kernel: face_model_forward.1
= control target key start
LH: loop header
LB: loop body
LE: loop exit
PB: predicated region body
PF: predicated region fallthrough
CT: control target
= control target key end

     0   :  { %13 = vsyncpa [#allocation3], 0  ;;  %s2797_s0 = inlined_call_operand.vmem [shape: bf16[2,48,216], index: 0, kind: input, shape index: {}]   ;;  %s2798_s1 = inlined_call_operand.vmem [shape: bf16[216,128], index: 1, kind: input, shape index: {}]   ;;  %s2799_s2 = inlined_call_operand.vmem [shape: f32[1,128], index: 2, kind: input, shape index: {}]   ;;  %s2800_s3 = inlined_call_operand.vmem [shape: f32[1,128], index: 3, kind: input, shape index: {}]   ;;  %s2801_s4 = inlined_call_operand.vmem [shape: bf16[6,128,256], index: 4, kind: input, shape index: {}]   ;;  %s2802_s5 = inlined_call_operand.vmem [shape: f32[8,256], index: 5, kind: input, shape index: {}]   ;;  %s2803_s6 = inlined_call_operand.vmem [shape: bf16[256,32], index: 6, kind: input, shape index: {}]   ;;  %s2804_s7 = inlined_call_operand.vmem [shape: f32[1,32], index: 7, kind: input, shape index: {}]   ;;  %s2805_s8 = inlined_call_operand.hbm [shape: f32[2,1,32], index: 8, kind: output, shape index: {}]  }
   0x1   :  { %15 = vsyncpa [#allocation3 + $0x1], 0  ;;  %s2243_s27 = smov 0   ;;  %s2245_s28 = smov 0  }
   0x2   :  { %s2247_s29 = smov 0   ;;  %s2249_s30 = smov 0  }
   0x3 LB: > { %s2264_s9 = sadd.s32 4294967295, %s2194_s30   ;;  %s1643_s10 = sadd.s32 4294967294, %s2194_s30   ;;  %s2194_s30 = sphi %s2249_s30, %s2811_s30   ;;  %s2190_s29 = sphi %s2247_s29, %s2810_s29   ;;  %s2186_s28 = sphi %s2245_s28, %s2809_s28   ;;  %s2182_s27 = sphi %s2243_s27, %s2808_s27  }
   0x4   : > { %s2268_s11 = sadd.s32 1, %s2194_s30   ;;  %s201_s12 = sadd.s32 1, %s2190_s29 }
   0x5   : > { %s198_s13 = ssub.s32 %s2194_s30, %s2268_s11  ;;  %p211_p0 = scmp.ne.s32.totalorder %s2190_s29, %s2186_s28 }
   0x6   : > { %p199_p1 = scmp.eq.s32.totalorder %s198_s13, 0  ;;  %p212_p2 = scmp.eq.s32.totalorder %s2264_s9, 1 }
   0x7   : > { %p217_p3 = scmp.ne.s32.totalorder %s2186_s28, %s2182_s27  ;;  %p218_p4 = scmp.eq.s32.totalorder %s1643_s10, 1 }
   0x8   : > { %s2279_s14 = scalar_select %p199_p1, %s2190_s29, %s201_s12  }
   0x9   : > { %p2281_p5 = por %p212_p2, %p211_p0  ;;  %p2285_p6 = por %p218_p4, %p217_p3 }
   0xa   : > { %p1646_p7 = scmp.ge.s32.totalorder %s2194_s30, 1  ;;  %p265_p8 = scmp.lt.s32.totalorder %s2194_s30, 3 }
   0xc   : > { %p266_p9 = pnand %p1646_p7, %p265_p8 }
   0xd   : > { %v1949_v0 = vld [vmem:[%s2798_s1] sm:$0xff] (!%p266_p9)   ;;  %v2196_v1 = vmov (!%p266_p9), 0   ;;  %v1950_v2 = vld [vmem:[%s2798_s1 + $0x8] sm:$0xff] (!%p266_p9)   ;;  %p298_p10 = scmp.lt.s32.totalorder (!%p266_p9), %s2264_s9, 1  ;;  %v1951_v3 = vld [vmem:[%s2798_s1 + $0x10] sm:$0xff] (!%p266_p9)   ;;  %vm452_vm0 = vcmask (!%p266_p9), 719872  }
   0xe   : > { %269 = sbr.rel (%p266_p9) target bundleno = 857 (0x359), region = 52  ;;  %466 = vmatprep.subr.bf16.mxu0 (!%p266_p9), %v2196_v1  ;;  %955 = vmatprep.mubr.bf16.mxu1 (!%p266_p9), %v2196_v1  ;;  %v1952_v4 = vld [vmem:[%s2798_s1 + $0x18] sm:$0xff] (!%p266_p9)   ;;  %v1953_v5 = vld [vmem:[%s2798_s1 + $0x20] sm:$0xff] (!%p266_p9)   ;;  %v1954_v7 = vld [vmem:[%s2798_s1 + $0x28] sm:$0xff] (!%p266_p9)   ;;  %vm462_vm1 = vcmask (!%p266_p9), 1043456   ;;  %vm1563_vm8 = vcmask (!%p266_p9), 261120  }
   0xf   : > { %467 = vmatpush1.bf16.msra.mxu0 (!%p266_p9), %v1949_v0  ;;  %v1978_v8 = vld [vmem:[%s2801_s4 + $0x104] ss:$8 sps:$4 sm:$0xff] (!%p266_p9)   ;;  %v1980_v9 = vld [vmem:[%s2801_s4 + $0x100] ss:$8 sps:$4 sm:$0xff] (!%p266_p9)   ;;  %v1955_v10 = vld [vmem:[%s2798_s1 + $0x30] sm:$0xff] (!%p266_p9)   ;;  %s296_s26 = sand.u32 (!%p266_p9), 1, %s2186_s28  }
  0x10   : > { %468 = vmatprep.subr.bf16.mxu0 (!%p266_p9), %v2196_v1  ;;  %923 = vmatprep.subr.bf16.mxu1 (!%p266_p9), %v1978_v8  ;;  %v1984_v11 = vld [vmem:[%s2801_s4 + $0x114] ss:$8 sps:$4 sm:$0xff] (!%p266_p9)   ;;  %v1986_v12 = vld [vmem:[%s2801_s4 + $0x110] ss:$8 sps:$4 sm:$0xff] (!%p266_p9)   ;;  %v1990_v14 = vld [vmem:[%s2801_s4 + $0x124] ss:$8 sps:$4 sm:$0xff] (!%p266_p9)  }
  0x11   : > { %924 = vmatpush1.bf16.msra.mxu1 (!%p266_p9), %v1980_v9  ;;  %v1956_v13 = vld [vmem:[%s2798_s1 + $0x38] sm:$0xff] (!%p266_p9)   ;;  %v1992_v15 = vld [vmem:[%s2801_s4 + $0x120] ss:$8 sps:$4 sm:$0xff] (!%p266_p9)   ;;  %v2002_v20 = vld [vmem:[%s2801_s4 + $0x144] ss:$8 sps:$4 sm:$0xff] (!%p266_p9)   ;;  %s1865_s17 = sshll.u32 (!%p266_p9), %s2264_s9, 4 }
  0x12   : > { %925 = vmatprep.subr.bf16.mxu1 (!%p266_p9), %v1984_v11  ;;  %v1996_v16 = vld [vmem:[%s2801_s4 + $0x134] ss:$8 sps:$4 sm:$0xff] (!%p266_p9)   ;;  %v1957_v17 = vld [vmem:[%s2798_s1 + $0x40] sm:$0xff] (!%p266_p9)   ;;  %v1998_v18 = vld [vmem:[%s2801_s4 + $0x130] ss:$8 sps:$4 sm:$0xff] (!%p266_p9)   ;;  %s297_s18 = scalar_lea.vmem (!%p266_p9), [#allocation2], %s296_s26 }
  0x13   : > { %469 = vmatpush1.bf16.msra.mxu0 (!%p266_p9), %v1950_v2  ;;  %v1958_v19 = vld [vmem:[%s2798_s1 + $0x48] sm:$0xff] (!%p266_p9)   ;;  %v1959_v21 = vld [vmem:[%s2798_s1 + $0x50] sm:$0xff] (!%p266_p9)   ;;  %v1960_v22 = vld [vmem:[%s2798_s1 + $0x58] sm:$0xff] (!%p266_p9)   ;;  %vm1573_vm9 = vcmask (!%p266_p9), 253952   ;;  %s1576_s22 = scalar_lea.sflag (!%p266_p9), [#allocation3], %s296_s26 }
  0x14   : > { %470 = vmatprep.subr.bf16.mxu0 (!%p266_p9), %v2196_v1  ;;  %v1961_v23 = vld [vmem:[%s2798_s1 + $0x60] sm:$0xff] (!%p266_p9)   ;;  %v1962_v24 = vld [vmem:[%s2798_s1 + $0x68] ss:$0 sps:$4 sm:$0xff] (!%p266_p9)   ;;  %v1977_v30 = vld [vmem:[%s2801_s4 + $0x94] ss:$8 sps:$4 sm:$0xff] (!%p266_p9)  }
  0x15   : > { %s299_s21 = scalar_select %p298_p10, %s2264_s9, 1  ;;  %926 = vmatpush1.bf16.msra.mxu1 %v1986_v12  ;;  %v1974_v25 = vld [vmem:[%s2801_s4 + $0x84] ss:$8 sps:$4 sm:$0xff]   ;;  %v464_v26 = vsel %vm462_vm1, %v1962_v24, 0  ;;  %v1972_v29 = vld [vmem:[%s2801_s4 + $0x80] ss:$8 sps:$4 sm:$0xff]  }
  0x16   : > { %927 = vmatprep.subr.bf16.mxu1 %v1990_v14  ;;  %v1975_v31 = vld [vmem:[%s2801_s4 + $0x90] ss:$8 sps:$4 sm:$0xff]   ;;  %v1983_v32 = vld [vmem:[%s2801_s4 + $0xa4] ss:$8 sps:$4 sm:$0xff]   ;;  %v1981_v35 = vld [vmem:[%s2801_s4 + $0xa0] ss:$8 sps:$4 sm:$0xff]  }
  0x17   : > { %s1908_s24 = smul.u32 48, %s299_s21  ;;  %471 = vmatpush1.bf16.msra.mxu0 %v1951_v3  ;;  %v1989_v36 = vld [vmem:[%s2801_s4 + $0xb4] ss:$8 sps:$4 sm:$0xff]   ;;  %v1987_v37 = vld [vmem:[%s2801_s4 + $0xb0] ss:$8 sps:$4 sm:$0xff]   ;;  %s2755_s21 = scalar_lea.hbm %s2805_s8, %s1865_s17 }
  0x18   : > { %472 = vmatprep.subr.bf16.mxu0 %v2196_v1  ;;  %v1995_v38 = vld [vmem:[%s2801_s4 + $0xc4] ss:$8 sps:$4 sm:$0xff]   ;;  %v1993_v40 = vld [vmem:[%s2801_s4 + $0xc0] ss:$8 sps:$4 sm:$0xff]   ;;  %v2001_v41 = vld [vmem:[%s2801_s4 + $0xd4] ss:$8 sps:$4 sm:$0xff]  }
  0x19   : > { %s2313_s13 = scalar_lea.vmem %s2797_s0, %s1908_s24  ;;  %928 = vmatpush1.bf16.msra.mxu1 %v1992_v15  ;;  %v1999_v42 = vld [vmem:[%s2801_s4 + $0xd0] ss:$8 sps:$4 sm:$0xff]   ;;  %v2004_v43 = vld [vmem:[%s2801_s4 + $0x140] ss:$8 sps:$4 sm:$0xff]   ;;  %v2007_v44 = vld [vmem:[%s2801_s4 + $0xe4] ss:$8 sps:$4 sm:$0xff]  }
  0x1a   : > { %v1965_v6 = vld [vmem:[%s2313_s13 + $0x4] ss:$8 sps:$4 sm:$0xff]   ;;  %929 = vmatprep.subr.bf16.mxu1 %v1996_v16  ;;  %v1963_v27 = vld [vmem:[%s2313_s13] ss:$8 sps:$4 sm:$0xff]   ;;  %v1966_v28 = vld [vmem:[%s2313_s13 + $0x14] ss:$8 sps:$4 sm:$0xff]  }
  0x1b   : > { %473 = vmatpush1.bf16.msra.mxu0 %v1952_v4  ;;  %1669 = vmatprep.mubr.msk.bf16.mxu0 %vm452_vm0, %v1965_v6  ;;  %v1968_v33 = vld [vmem:[%s2313_s13 + $0x10] ss:$8 sps:$4 sm:$0xff]   ;;  %v1969_v34 = vld [vmem:[%s2313_s13 + $0x24] ss:$8 sps:$4 sm:$0xff]   ;;  %v1971_v39 = vld [vmem:[%s2313_s13 + $0x20] ss:$8 sps:$4 sm:$0xff]  }
  0x1c   : > { %474 = vmatprep.subr.bf16.mxu0 %v2196_v1  ;;  %v2005_v45 = vld [vmem:[%s2801_s4 + $0xe0] ss:$8 sps:$4 sm:$0xff]   ;;  %v2008_v46 = vld [vmem:[%s2801_s4 + $0x154] ss:$8 sps:$4 sm:$0xff]   ;;  %v2010_v47 = vld [vmem:[%s2801_s4 + $0x150] ss:$8 sps:$4 sm:$0xff]  }
  0x1d   : > { %930 = vmatpush1.bf16.msra.mxu1 %v1998_v18  ;;  %v2013_v48 = vld [vmem:[%s2801_s4 + $0xf4] ss:$8 sps:$4 sm:$0xff]   ;;  %v2011_v49 = vld [vmem:[%s2801_s4 + $0xf0] ss:$8 sps:$4 sm:$0xff]   ;;  %v2014_v50 = vld [vmem:[%s2801_s4 + $0x164] ss:$8 sps:$4 sm:$0xff]  }
  0x1e   : > { %931 = vmatprep.subr.bf16.mxu1 %v2002_v20  ;;  %v2016_v51 = vld [vmem:[%s2801_s4 + $0x160] ss:$8 sps:$4 sm:$0xff]   ;;  %v2019_v52 = vld [vmem:[%s2801_s4 + $0x4] ss:$8 sps:$4 sm:$0xff]   ;;  %v2020_v53 = vld [vmem:[%s2801_s4 + $0x174] ss:$8 sps:$4 sm:$0xff]  }
  0x1f   : > { %475 = vmatpush1.bf16.msra.mxu0 %v1953_v5  ;;  %v2022_v54 = vld [vmem:[%s2801_s4 + $0x170] ss:$8 sps:$4 sm:$0xff]   ;;  %v2028_v55 = vld [vmem:[%s2801_s4 + $0x184] ss:$8 sps:$4 sm:$0xff]   ;;  %v2472_v58 = vld [vmem:[%s2799_s2] ss:$0 sm:$0xff] }
  0x20   : > { %476 = vmatprep.subr.bf16.mxu0 %v2196_v1  ;;  %v2478_v62 = vld [vmem:[%s2800_s3] ss:$0 sm:$0xff]  ;;  %v2025_v5 = vld [vmem:[%s2801_s4 + $0x14] ss:$8 sps:$4 sm:$0xff]   ;;  %v2023_v11 = vld [vmem:[%s2801_s4 + $0x10] ss:$8 sps:$4 sm:$0xff]  }
  0x21   : > { %932 = vmatpush1.bf16.msra.mxu1 %v2004_v43  ;;  %v2017_v2 = vld [vmem:[%s2801_s4] ss:$8 sps:$4 sm:$0xff]   ;;  %v2031_v12 = vld [vmem:[%s2801_s4 + $0x24] ss:$8 sps:$4 sm:$0xff]   ;;  %v2034_v16 = vld [vmem:[%s2801_s4 + $0x194] ss:$8 sps:$4 sm:$0xff]  }
  0x22   : > { %933 = vmatprep.subr.bf16.mxu1 %v2008_v46  ;;  %v2037_v18 = vld [vmem:[%s2801_s4 + $0x34] ss:$8 sps:$4 sm:$0xff]   ;;  %v2032_v20 = vld [vmem:[%s2801_s4 + $0x190] ss:$8 sps:$4 sm:$0xff]   ;;  %s1588_s13 = sshll.u32 %s297_s18, 4  ;;  %s2197_s9 = smov [#allocation2]   ;;  %s2757_s13 = int_to_ptr.vmem [resolvable:$true] %s1588_s13 }
  0x23   : > { %477 = vmatpush1.bf16.msra.mxu0 %v1954_v7  ;;  %v2058_v43 = vld [vmem:[%s2801_s4 + $0x1d4] ss:$8 sps:$4 sm:$0xff]   ;;  %s2132_s23 = scalar_lea.vmem %s2757_s13, 16  ;;  %s2136_s24 = sshll.u32 %s2197_s9, 4  ;;  %s2137_s24 = int_to_ptr.vmem [resolvable:$false] %s2136_s24 }
  0x24   : > { %478 = vmatprep.subr.bf16.mxu0 %v2196_v1  ;;  %p2133_p11 = scmp.ne.s32.totalorder %s2757_s13, %s2132_s23  ;;  %s2138_s25 = scalar_lea.vmem %s2137_s24, 32 }
  0x25   : > { %934 = vmatpush1.bf16.msra.mxu1 %v2010_v47  ;;  %v2056_v47 = vld [vmem:[%s2801_s4 + $0x1d0] ss:$8 sps:$4 sm:$0xff]   ;;  %p2139_p0 = scmp.lt.s32.totalorder %s2757_s13, %s2137_s24  ;;  %p2140_p1 = scmp.lt.s32.totalorder %s2138_s25, %s2132_s23 }
  0x26   : > { %935 = vmatprep.subr.bf16.mxu1 %v2014_v50  ;;  %v2059_v50 = vld [vmem:[%s2801_s4 + $0x70] ss:$8 sps:$4 sm:$0xff]   ;;  %p2134_p12 = pnand %p2133_p11, %p2281_p5 }
  0x27   : > { %479 = vmatpush1.bf16.msra.mxu0 %v1955_v10  ;;  %p2141_p2 = por %p2140_p1, %p2139_p0 }
  0x28   : > { %480 = vmatprep.subr.bf16.mxu0 %v2196_v1  ;;  %p2135_p13 = pneg %p2134_p12 }
  0x29   : > { %936 = vmatpush1.bf16.msra.mxu1 %v2016_v51 }
  0x2a   : > { %937 = vmatprep.subr.bf16.mxu1 %v2020_v53  ;;  %v2067_v53 = vld [vmem:[%s2801_s4 + $0x1f4] ss:$8 sps:$4 sm:$0xff]   ;;  %p2142_p3 = pnand %p2141_p2, %p2135_p13 }
  0x2b   : > { %481 = vmatpush1.bf16.msra.mxu0 %v1956_v13  ;;  %v2026_v13 = vld [vmem:[%s2801_s4 + $0x180] ss:$8 sps:$4 sm:$0xff]  }
  0x2c   : > { %482 = vmatprep.subr.bf16.mxu0 %v2196_v1 }
  0x2d   : > { %938 = vmatpush1.bf16.msra.mxu1 %v2022_v54 }
  0x2e   : > { %1064 = vmatprep.subr.bf16.mxu1 %v2028_v55 }
  0x2f   : > { %483 = vmatpush1.bf16.msra.mxu0 %v1957_v17  ;;  %v2029_v17 = vld [vmem:[%s2801_s4 + $0x20] ss:$8 sps:$4 sm:$0xff]  }
  0x30   : > { %484 = vmatprep.subr.bf16.mxu0 %v2196_v1 }
  0x33   : > { %485 = vmatpush1.bf16.msra.mxu0 %v1958_v19 }
  0x34   : > { %486 = vmatprep.subr.bf16.mxu0 %v2196_v1 }
  0x37   : > { %487 = vmatpush1.bf16.msra.mxu0 %v1959_v21 }
  0x38   : > { %488 = vmatprep.subr.bf16.mxu0 %v2196_v1 }
  0x3b   : > { %489 = vmatpush1.bf16.msra.mxu0 %v1960_v22 }
  0x3c   : > { %490 = vmatprep.subr.bf16.mxu0 %v2196_v1 }
  0x3f   : > { %491 = vmatpush1.bf16.msra.mxu0 %v1961_v23  ;;  %v2040_v23 = vld [vmem:[%s2801_s4 + $0x1a4] ss:$8 sps:$4 sm:$0xff]  }
  0x40   : > { %492 = vmatprep.subr.bf16.mxu0 %v2196_v1 }
  0x43   : > { %493 = vmatpush1.bf16.msra.mxu0 %v464_v26 }
  0x44   : > { %663 = vmatprep.subr.bf16.mxu0 %v1974_v25  ;;  %v2035_v25 = vld [vmem:[%s2801_s4 + $0x30] ss:$8 sps:$4 sm:$0xff]  }
  0x46   : > { %499 = vmatmul.mubr.bf16.vlgmr.msra.gmra.mrb[0].mxu0 %v1963_v27 }
  0x47   : > { %1670 = vmatprep.mubr.msk.bf16.mxu0 %vm452_vm0, %v1966_v28  ;;  %664 = vmatpush1.bf16.msra.mxu0 %v1972_v29  ;;  %v2043_v29 = vld [vmem:[%s2801_s4 + $0x44] ss:$8 sps:$4 sm:$0xff]  }
  0x48   : > { %665 = vmatprep.subr.bf16.mxu0 %v1977_v30  ;;  %v2038_v30 = vld [vmem:[%s2801_s4 + $0x1a0] ss:$8 sps:$4 sm:$0xff]  }
  0x4b   : > { %666 = vmatpush1.bf16.msra.mxu0 %v1975_v31 }
  0x4c   : > { %667 = vmatprep.subr.bf16.mxu0 %v1983_v32 }
  0x4e   : > { %507 = vmatmul.mubr.bf16.gmra.mrb[4].mxu0 %v1968_v33  ;;  %v2046_v33 = vld [vmem:[%s2801_s4 + $0x1b4] ss:$8 sps:$4 sm:$0xff]  }
  0x4f   : > { %1671 = vmatprep.mubr.msk.bf16.mxu0 %vm452_vm0, %v1969_v34  ;;  %668 = vmatpush1.bf16.msra.mxu0 %v1981_v35  ;;  %v2041_v34 = vld [vmem:[%s2801_s4 + $0x40] ss:$8 sps:$4 sm:$0xff]  }
  0x50   : > { %669 = vmatprep.subr.bf16.mxu0 %v1989_v36  ;;  %v2049_v36 = vld [vmem:[%s2801_s4 + $0x54] ss:$8 sps:$4 sm:$0xff]  }
  0x53   : > { %670 = vmatpush1.bf16.msra.mxu0 %v1987_v37  ;;  %v2044_v37 = vld [vmem:[%s2801_s4 + $0x1b0] ss:$8 sps:$4 sm:$0xff]  }
  0x54   : > { %671 = vmatprep.subr.bf16.mxu0 %v1995_v38  ;;  %v2052_v38 = vld [vmem:[%s2801_s4 + $0x1c4] ss:$8 sps:$4 sm:$0xff]  }
  0x56   : > { %515 = vmatmul.mubr.bf16.gmra.mrb[8].mxu0 %v1971_v39  ;;  %v2047_v39 = vld [vmem:[%s2801_s4 + $0x50] ss:$8 sps:$4 sm:$0xff]  }
  0x57   : > { %672 = vmatpush1.bf16.msra.mxu0 %v1993_v40  ;;  %695 = vmatprep.mubr.bf16.mxu0 %v2196_v1  ;;  %v2055_v40 = vld [vmem:[%s2801_s4 + $0x64] ss:$8 sps:$4 sm:$0xff]  }
  0x58   : > { %673 = vmatprep.subr.bf16.mxu0 %v2001_v41 }
  0x5b   : > { %674 = vmatpush1.bf16.msra.mxu0 %v1999_v42  ;;  %v2050_v42 = vld [vmem:[%s2801_s4 + $0x1c0] ss:$8 sps:$4 sm:$0xff]  }
  0x5c   : > { %675 = vmatprep.subr.bf16.mxu0 %v2007_v44  ;;  %v2053_v44 = vld [vmem:[%s2801_s4 + $0x60] ss:$8 sps:$4 sm:$0xff]  }
  0x5f   : > { %676 = vmatpush1.bf16.msra.mxu0 %v2005_v45  ;;  %v2061_v45 = vld [vmem:[%s2801_s4 + $0x74] ss:$8 sps:$4 sm:$0xff]  }
  0x60   : > { %677 = vmatprep.subr.bf16.mxu0 %v2013_v48  ;;  %v2064_v48 = vld [vmem:[%s2801_s4 + $0x1e4] ss:$8 sps:$4 sm:$0xff]  }
  0x63   : > { %678 = vmatpush1.bf16.msra.mxu0 %v2011_v49 }
  0x64   : > { %784 = vmatprep.subr.bf16.mxu0 %v2019_v52  ;;  %v2062_v52 = vld [vmem:[%s2801_s4 + $0x1e0] ss:$8 sps:$4 sm:$0xff]  }
 0x119   : > { %v2467_v56 = vpop.f32.mrb[0].mxu0 }
 0x11a   : > { %v502_v57 = vpop.f32.mrb[1].mxu0  ;;  %v501_v41 = vadd.f32 %v2472_v58, %v2467_v56  ;;  %v2065_v56 = vld [vmem:[%s2801_s4 + $0x1f0] ss:$8 sps:$4 sm:$0xff]  }
 0x11b   : > { %v503_v59 = vpop.f32.mrb[2].mxu0  ;;  %v2070_v57 = vld [vmem:[%s2801_s4 + $0x204] ss:$8 sps:$4 sm:$0xff]  }
 0x11c   : > { %v504_v60 = vadd.f32 %v2472_v58, %v503_v59  ;;  %v505_v61 = vpop.f32.mrb[3].mxu0  ;;  %v536_v46 = vmul.f32 %v2478_v62, %v501_v41  ;;  %vm523_vm6 = vcmp.ge.f32.partialorder %v501_v41, 0.0  ;;  %v2068_v59 = vld [vmem:[%s2801_s4 + $0x200] ss:$8 sps:$4 sm:$0xff]  }
 0x11d   : > { %v2073_v61 = vld [vmem:[%s2801_s4 + $0x214] ss:$8 sps:$4 sm:$0xff]  }
 0x11e   : > { %vm524_vm2 = vcmp.ge.f32.partialorder %v504_v60, 0.0  ;;  %v537_v63 = vmul.f32 %v2478_v62, %v504_v60  ;;  %v542_v51 = vsel %vm523_vm6, %v501_v41, %v536_v46  ;;  %v2128_v41 = vld [vmem:[%s2803_s6 + $0x70] sm:$0xff]  }
 0x11f   : > { %v548_v55 = vpack.c.bf16 %v542_v51, %v542_v51 }
 0x120   : > { %v543_v0 = vsel %vm524_vm2, %v504_v60, %v537_v63  ;;  %v2076_v63 = vld [vmem:[%s2801_s4 + $0x224] ss:$8 sps:$4 sm:$0xff]  }
 0x121   : > { %v565_v3 = vpack.c.bf16 %v543_v0, %v543_v0  ;;  %v508_v4 = vpop.f32.mrb[4].mxu0  ;;  %v2074_v0 = vld [vmem:[%s2801_s4 + $0x220] ss:$8 sps:$4 sm:$0xff]  }
 0x122   : > { %v509_v6 = vadd.f32 %v2472_v58, %v508_v4  ;;  %v510_v7 = vpop.f32.mrb[5].mxu0  ;;  %v2082_v4 = vld [vmem:[%s2801_s4 + $0x244] ss:$8 sps:$4 sm:$0xff]  }
 0x123   : > { %v2488_v8 = vpop.f32.mrb[6].mxu0  ;;  %696 = vmatmul.mubr.bf16.vlgmr.msra.gmra.mrb[12].mxu0 %v565_v3  ;;  %v2077_v3 = vld [vmem:[%s2801_s4 + $0x230] ss:$8 sps:$4 sm:$0xff]  }
 0x124   : > { %vm525_vm3 = vcmp.ge.f32.partialorder %v509_v6, 0.0  ;;  %v538_v9 = vmul.f32 %v2478_v62, %v509_v6  ;;  %785 = vmatpush1.bf16.msra.mxu0 %v2017_v2  ;;  %v513_v10 = vpop.f32.mrb[7].mxu0  ;;  %816 = vmatprep.mubr.bf16.mxu0 %v2196_v1  ;;  %v512_v49 = vadd.f32 %v2472_v58, %v2488_v8  ;;  %v2079_v2 = vld [vmem:[%s2801_s4 + $0x234] ss:$8 sps:$4 sm:$0xff]   ;;  %v2083_v7 = vld [vmem:[%s2801_s4 + $0x250] ss:$8 sps:$4 sm:$0xff]  }
 0x125   : > { %786 = vmatprep.subr.bf16.mxu0 %v2025_v5  ;;  %v2080_v5 = vld [vmem:[%s2801_s4 + $0x240] ss:$8 sps:$4 sm:$0xff]   ;;  %v2088_v8 = vld [vmem:[%s2801_s4 + $0x264] ss:$8 sps:$4 sm:$0xff]   ;;  %v2091_v10 = vld [vmem:[%s2801_s4 + $0x274] ss:$8 sps:$4 sm:$0xff]  }
 0x126   : > { %v544_v14 = vsel %vm525_vm3, %v509_v6, %v538_v9  ;;  %v539_v54 = vmul.f32 %v2478_v62, %v512_v49  ;;  %vm526_vm7 = vcmp.ge.f32.partialorder %v512_v49, 0.0  ;;  %v2085_v6 = vld [vmem:[%s2801_s4 + $0x254] ss:$8 sps:$4 sm:$0xff]   ;;  %v2086_v9 = vld [vmem:[%s2801_s4 + $0x260] ss:$8 sps:$4 sm:$0xff]  }
 0x127   : > { %v825_v15 = vpack.c.bf16 %v544_v14, %v544_v14  ;;  %v2092_v14 = vld [vmem:[%s2801_s4 + $0x280] ss:$8 sps:$4 sm:$0xff]  }
 0x128   : > { %787 = vmatpush1.bf16.msra.mxu0 %v2023_v11  ;;  %v2089_v11 = vld [vmem:[%s2801_s4 + $0x270] ss:$8 sps:$4 sm:$0xff]  }
 0x129   : > { %956 = vmatmul.mubr.bf16.vlgmr.msra.gmra.mrb[0].mxu1 %v825_v15  ;;  %788 = vmatprep.subr.bf16.mxu0 %v2031_v12  ;;  %v516_v19 = vpop.f32.mrb[8].mxu0  ;;  %v2094_v12 = vld [vmem:[%s2801_s4 + $0x284] ss:$8 sps:$4 sm:$0xff]   ;;  %v2097_v15 = vld [vmem:[%s2801_s4 + $0x294] ss:$8 sps:$4 sm:$0xff]  }
 0x12a   : > { %1065 = vmatpush1.bf16.msra.mxu1 %v2026_v13  ;;  %1096 = vmatprep.mubr.bf16.mxu1 %v2196_v1  ;;  %v517_v21 = vadd.f32 %v2472_v58, %v516_v19  ;;  %v518_v22 = vpop.f32.mrb[9].mxu0  ;;  %v2103_v19 = vld [vmem:[%s2801_s4 + $0x2b4] ss:$8 sps:$4 sm:$0xff]  }
 0x12b   : > { %1066 = vmatprep.subr.bf16.mxu1 %v2034_v16  ;;  %v519_v24 = vpop.f32.mrb[10].mxu0  ;;  %v2095_v16 = vld [vmem:[%s2801_s4 + $0x290] ss:$8 sps:$4 sm:$0xff]   ;;  %v2109_v22 = vld [vmem:[%s2801_s4 + $0x2d4] ss:$8 sps:$4 sm:$0xff]  }
 0x12c   : > { %789 = vmatpush1.bf16.msra.mxu0 %v2029_v17  ;;  %vm527_vm4 = vcmp.ge.f32.partialorder %v517_v21, 0.0  ;;  %v540_v26 = vmul.f32 %v2478_v62, %v517_v21  ;;  %v520_v27 = vadd.f32 %v2472_v58, %v519_v24  ;;  %v521_v28 = vpop.f32.mrb[11].mxu0  ;;  %v545_v58 = vsel %vm526_vm7, %v512_v49, %v539_v54  ;;  %v2100_v17 = vld [vmem:[%s2801_s4 + $0x2a4] ss:$8 sps:$4 sm:$0xff]  }
 0x12d   : > { %790 = vmatprep.subr.bf16.mxu0 %v2037_v18  ;;  %v966_v60 = vpack.c.bf16 %v545_v58, %v545_v58  ;;  %v2098_v18 = vld [vmem:[%s2801_s4 + $0x2a0] ss:$8 sps:$4 sm:$0xff]   ;;  %v2112_v24 = vld [vmem:[%s2801_s4 + $0x2e4] ss:$8 sps:$4 sm:$0xff]  }
 0x12e   : > { %1067 = vmatpush1.bf16.msra.mxu1 %v2032_v20  ;;  %v2529_v31 = vsel %vm527_vm4, %v517_v21, %v540_v26  ;;  %vm528_vm5 = vcmp.ge.f32.partialorder %v520_v27, 0.0  ;;  %v541_v32 = vmul.f32 %v2478_v62, %v520_v27  ;;  %v2071_v62 = vld [vmem:[%s2801_s4 + $0x210] ss:$8 sps:$4 sm:$0xff]   ;;  %v2106_v20 = vld [vmem:[%s2801_s4 + $0x2c4] ss:$8 sps:$4 sm:$0xff]  }
 0x12f   : > { %1068 = vmatprep.subr.bf16.mxu1 %v2040_v23  ;;  %v1107_v13 = vpack.c.bf16 %v2529_v31, %v2529_v31  ;;  %v2104_v21 = vld [vmem:[%s2801_s4 + $0x2c0] ss:$8 sps:$4 sm:$0xff]   ;;  %v2107_v23 = vld [vmem:[%s2801_s4 + $0x2d0] ss:$8 sps:$4 sm:$0xff]   ;;  %v2115_v26 = vld [vmem:[%s2801_s4 + $0x2f4] ss:$8 sps:$4 sm:$0xff]  }
 0x130   : > { %791 = vmatpush1.bf16.msra.mxu0 %v2035_v25  ;;  %v2538_v35 = vsel %vm528_vm5, %v520_v27, %v541_v32  ;;  %v2110_v25 = vld [vmem:[%s2801_s4 + $0x2e0] ss:$8 sps:$4 sm:$0xff]   ;;  %v2113_v27 = vld [vmem:[%s2801_s4 + $0x2f0] ss:$8 sps:$4 sm:$0xff]  }
 0x131   : > { %792 = vmatprep.subr.bf16.mxu0 %v2043_v29  ;;  %v1248_v28 = vpack.c.bf16 %v2538_v35, %v2538_v35  ;;  %v2116_v29 = vld [vmem:[%s2803_s6 + $0x40] sm:$0xff]   ;;  %v2118_v31 = vld [vmem:[%s2803_s6 + $0x48] sm:$0xff]   ;;  %v2122_v35 = vld [vmem:[%s2803_s6 + $0x58] sm:$0xff]  }
 0x132   : > { %1069 = vmatpush1.bf16.msra.mxu1 %v2038_v30  ;;  %v2117_v30 = vld [vmem:[%s2803_s6] sm:$0xff]   ;;  %v2119_v32 = vld [vmem:[%s2803_s6 + $0x8] sm:$0xff]  }
 0x133   : > { %1070 = vmatprep.subr.bf16.mxu1 %v2046_v33  ;;  %v2120_v33 = vld [vmem:[%s2803_s6 + $0x50] sm:$0xff]  }
 0x134   : > { %793 = vmatpush1.bf16.msra.mxu0 %v2041_v34  ;;  %v2121_v34 = vld [vmem:[%s2803_s6 + $0x10] sm:$0xff]  }
 0x135   : > { %794 = vmatprep.subr.bf16.mxu0 %v2049_v36  ;;  %v2123_v36 = vld [vmem:[%s2803_s6 + $0x18] sm:$0xff]  }
 0x136   : > { %1071 = vmatpush1.bf16.msra.mxu1 %v2044_v37  ;;  %v2124_v37 = vld [vmem:[%s2803_s6 + $0x60] sm:$0xff]  }
 0x137   : > { %1072 = vmatprep.subr.bf16.mxu1 %v2052_v38  ;;  %v2125_v38 = vld [vmem:[%s2803_s6 + $0x20] sm:$0xff]  }
 0x138   : > { %795 = vmatpush1.bf16.msra.mxu0 %v2047_v39  ;;  %v2126_v39 = vld [vmem:[%s2803_s6 + $0x68] sm:$0xff]  }
 0x139   : > { %796 = vmatprep.subr.bf16.mxu0 %v2055_v40  ;;  %v2127_v40 = vld [vmem:[%s2803_s6 + $0x28] sm:$0xff]  }
 0x13a   : > { %1073 = vmatpush1.bf16.msra.mxu1 %v2050_v42  ;;  %v2129_v42 = vld [vmem:[%s2803_s6 + $0x30] sm:$0xff]  }
 0x13b   : > { %1074 = vmatprep.subr.bf16.mxu1 %v2058_v43  ;;  %v2130_v43 = vld [vmem:[%s2803_s6 + $0x78] sm:$0xff]  }
 0x13c   : > { %797 = vmatpush1.bf16.msra.mxu0 %v2053_v44  ;;  %v2131_v44 = vld [vmem:[%s2803_s6 + $0x38] sm:$0xff]  }
 0x13d   : > { %798 = vmatprep.subr.bf16.mxu0 %v2061_v45 }
 0x13e   : > { %1075 = vmatpush1.bf16.msra.mxu1 %v2056_v47 }
 0x13f   : > { %1076 = vmatprep.subr.bf16.mxu1 %v2064_v48 }
 0x140   : > { %799 = vmatpush1.bf16.msra.mxu0 %v2059_v50  ;;  %v1389_v50 = vld [vmem:[%s2802_s5] sm:$0xff] }
 0x141   : > { %1868 = vmatprep.subr.bf16.mxu0 %v2116_v29 }
 0x142   : > { %1077 = vmatpush1.bf16.msra.mxu1 %v2062_v52 }
 0x143   : > { %817 = vmatmul.mubr.bf16.vlgmr.msra.gmra.mrb[12].mxu0 %v548_v55  ;;  %1078 = vmatprep.subr.bf16.mxu1 %v2067_v53  ;;  %v1390_v53 = vld [vmem:[%s2802_s5 + $0x8] sm:$0xff] }
 0x144   : > { %1869 = vmatpush3.bf16.msra.mxu0 %v2117_v30 }
 0x145   : > { %1870 = vmatprep.subr.bf16.mxu0 %v2118_v31 }
 0x146   : > { %1079 = vmatpush1.bf16.msra.mxu1 %v2065_v56 }
 0x147   : > { %1205 = vmatprep.subr.bf16.mxu1 %v2070_v57 }
 0x148   : > { %1871 = vmatpush3.bf16.msra.mxu0 %v2119_v32 }
 0x149   : > { %1097 = vmatmul.mubr.bf16.vlgmr.msra.gmra.mrb[0].mxu1 %v966_v60  ;;  %1872 = vmatprep.subr.bf16.mxu0 %v2120_v33 }
 0x14a   : > { %1206 = vmatpush1.bf16.msra.mxu1 %v2068_v59  ;;  %1237 = vmatprep.mubr.bf16.mxu1 %v2196_v1 }
 0x14b   : > { %1207 = vmatprep.subr.bf16.mxu1 %v2073_v61 }
 0x14c   : > { %1873 = vmatpush3.bf16.msra.mxu0 %v2121_v34 }
 0x14d   : > { %1874 = vmatprep.subr.bf16.mxu0 %v2122_v35 }
 0x14e   : > { %1208 = vmatpush1.bf16.msra.mxu1 %v2071_v62 }
 0x14f   : > { %1209 = vmatprep.subr.bf16.mxu1 %v2076_v63 }
 0x150   : > { %1875 = vmatpush3.bf16.msra.mxu0 %v2123_v36 }
 0x151   : > { %1876 = vmatprep.subr.bf16.mxu0 %v2124_v37 }
 0x152   : > { %1210 = vmatpush1.bf16.msra.mxu1 %v2074_v0 }
 0x153   : > { %1211 = vmatprep.subr.bf16.mxu1 %v2079_v2 }
 0x154   : > { %1877 = vmatpush3.bf16.msra.mxu0 %v2125_v38 }
 0x155   : > { %1878 = vmatprep.subr.bf16.mxu0 %v2126_v39 }
 0x156   : > { %1212 = vmatpush1.bf16.msra.mxu1 %v2077_v3 }
 0x157   : > { %1213 = vmatprep.subr.bf16.mxu1 %v2082_v4 }
 0x158   : > { %1879 = vmatpush3.bf16.msra.mxu0 %v2127_v40 }
 0x159   : > { %1880 = vmatprep.subr.bf16.mxu0 %v2128_v41 }
 0x15a   : > { %1214 = vmatpush1.bf16.msra.mxu1 %v2080_v5 }
 0x15b   : > { %1215 = vmatprep.subr.bf16.mxu1 %v2085_v6 }
 0x15c   : > { %1881 = vmatpush3.bf16.msra.mxu0 %v2129_v42 }
 0x15d   : > { %1882 = vmatprep.subr.bf16.mxu0 %v2130_v43 }
 0x15e   : > { %1216 = vmatpush1.bf16.msra.mxu1 %v2083_v7 }
 0x15f   : > { %1217 = vmatprep.subr.bf16.mxu1 %v2088_v8 }
 0x160   : > { %1883 = vmatpush3.bf16.msra.mxu0 %v2131_v44 }
 0x162   : > { %1218 = vmatpush1.bf16.msra.mxu1 %v2086_v9  ;;  %v1571_v9 = vld [vmem:[%s2804_s7] sm:$0x1] }
 0x163   : > { %1219 = vmatprep.subr.bf16.mxu1 %v2091_v10 }
 0x166   : > { %1220 = vmatpush1.bf16.msra.mxu1 %v2089_v11 }
 0x167   : > { %1346 = vmatprep.subr.bf16.mxu1 %v2094_v12 }
 0x169   : > { %1238 = vmatmul.mubr.bf16.vlgmr.msra.gmra.mrb[0].mxu1 %v1107_v13 }
 0x16a   : > { %1347 = vmatpush1.bf16.msra.mxu1 %v2092_v14  ;;  %1378 = vmatprep.mubr.bf16.mxu1 %v2196_v1  ;;  %v2101_v1 = vld [vmem:[%s2801_s4 + $0x2b0] ss:$8 sps:$4 sm:$0xff]  }
 0x16b   : > { %1348 = vmatprep.subr.bf16.mxu1 %v2097_v15 }
 0x16e   : > { %1349 = vmatpush1.bf16.msra.mxu1 %v2095_v16 }
 0x16f   : > { %1350 = vmatprep.subr.bf16.mxu1 %v2100_v17 }
 0x172   : > { %1351 = vmatpush1.bf16.msra.mxu1 %v2098_v18 }
 0x173   : > { %1352 = vmatprep.subr.bf16.mxu1 %v2103_v19 }
 0x176   : > { %1353 = vmatpush1.bf16.msra.mxu1 %v2101_v1 }
 0x177   : > { %1354 = vmatprep.subr.bf16.mxu1 %v2106_v20 }
 0x17a   : > { %1355 = vmatpush1.bf16.msra.mxu1 %v2104_v21 }
 0x17b   : > { %1356 = vmatprep.subr.bf16.mxu1 %v2109_v22 }
 0x17e   : > { %1357 = vmatpush1.bf16.msra.mxu1 %v2107_v23 }
 0x17f   : > { %1358 = vmatprep.subr.bf16.mxu1 %v2112_v24 }
 0x182   : > { %1359 = vmatpush1.bf16.msra.mxu1 %v2110_v25 }
 0x183   : > { %1360 = vmatprep.subr.bf16.mxu1 %v2115_v26 }
 0x186   : > { %1361 = vmatpush1.bf16.msra.mxu1 %v2113_v27 }
 0x189   : > { %1379 = vmatmul.mubr.bf16.vlgmr.msra.gmra.mrb[0].mxu1 %v1248_v28 }
 0x216   : > { %v818_v45 = vpop.f32.mrb[12].mxu0 }
 0x217   : > { %v820_v46 = vpop.f32.mrb[13].mxu0 }
 0x218   : > { %v822_v47 = vpop.f32.mrb[14].mxu0 }
 0x219   : > { %v823_v48 = vpop.f32.mrb[15].mxu0 }
 0x25c   : > { %v1380_v49 = vpop.f32.mrb[0].mxu1 }
 0x25d   : > { %v1890_v51 = vadd.f32 %v1380_v49, %v818_v45  ;;  %v1382_v52 = vpop.f32.mrb[1].mxu1 }
 0x25e   : > { %v1891_v54 = vadd.f32 %v1382_v52, %v820_v46  ;;  %v1384_v55 = vpop.f32.mrb[2].mxu1 }
 0x25f   : > { %v1391_v56 = vmul.f32 %v1890_v51, %v1389_v50  ;;  %v1385_v57 = vpop.f32.mrb[3].mxu1 }
 0x260   : > { %v1392_v58 = vmul.f32 %v1891_v54, %v1390_v53 }
 0x261   : > { %v1393_v60 = vpack.c.bf16 %v1391_v56, %v1391_v56 }
 0x262   : > { %v1394_v59 = vpack.c.bf16 %v1392_v58, %v1392_v58 }
 0x264   : > { %1555 = vmatprep.mubr.bf16.mxu0 %v1394_v59 }
 0x265   : > { %1556 = vmatmul.mubr.bf16.vlgmr.msra.gmra.mrb[16].mxu0 %v1393_v60 }
 0x338   : > { %v1884_v61 = vpop.f32.mrb[16].mxu0 }
 0x339   : > { %v1885_v62 = vpop.f32.mrb[17].mxu0 }
 0x33a   : > { %v1886_v63 = vadd.f32 %v1885_v62, %v1884_v61  ;;  %v1887_v0 = vpop.f32.mrb[18].mxu0 }
 0x33b   : > { %v1888_v2 = vpop.f32.mrb[19].mxu0 }
 0x33c   : > { %v1564_v3 = vsel %vm1563_vm8, %v1886_v63, 0.0 }
 0x33d   : > { %v1565_v4 = vrot.slane %v1564_v3, 4 }
 0x33f   : > { %v1566_v5 = vadd.f32 %v1565_v4, %v1564_v3 }
 0x341   : > { %v1567_v6 = vrot.slane %v1566_v5, 2 }
 0x343   : > { %v1568_v7 = vadd.f32 %v1567_v6, %v1566_v5 }
 0x345   : > { %v1569_v8 = vrot.slane %v1568_v7, 1 }
 0x347   : > { %v1570_v10 = vadd.f32 %v1569_v8, %v1568_v7 }
 0x349   : > { %v1572_v11 = vadd.f32 %v1571_v9, %v1570_v10 }
 0x34b   : > { %1574 = vst.msk [vmem:[%s297_s18] sm:$0x1] %vm1573_vm9, %v1572_v11 }
 0x34c   : > { %2145 = shalt.err (!%p2142_p3)
}
 0x34d   : > { %s2146_s26 = scalar_lea.hbm %s2755_s21, 16  ;;  %s2150_s17 = scalar_lea.hbm %s2805_s8, 32 }
 0x34e   : > { %p2147_p4 = scmp.ne.s32.totalorder %s2755_s21, %s2146_s26  ;;  %p2151_p9 = scmp.lt.u32.totalorder %s2755_s21, %s2805_s8 }
 0x34f   : > { %p2152_p10 = scmp.lt.u32.totalorder %s2150_s17, %s2146_s26  ;;  %p2154_p12 = scmp.lt.u32.totalorder %s2146_s26, %s2755_s21 }
 0x350   : > { %p2148_p7 = pnand %p2147_p4, %p2281_p5 }
 0x351   : > { %p2153_p11 = por %p2152_p10, %p2151_p9 }
 0x352   : > { %p2149_p8 = pneg %p2148_p7 }
 0x353   : > { %p2155_p13 = por %p2154_p12, %p2153_p11 }
 0x355   : > { %p2156_p0 = pnand %p2155_p13, %p2149_p8 }
 0x357   : > { %2159 = shalt.err (!%p2156_p0)
}
 0x358   : > { %1909 = dma.vmem_to_hbm [thread:$0]  (%p2281_p5), %s2757_s13, 16, %s2755_s21, %s1576_s22  }
 0x359 PF: > { %p1915_p1 = scmp.ge.s32.totalorder %s2194_s30, 2  ;;  %s1600_s20 = sand.u32 1, %s2182_s27  }
 0x35a   : > { %s1601_s23 = scalar_lea.sflag [#allocation3], %s1600_s20 }
 0x35b   : > { %p1912_p2 = pnand %p1915_p1, %p2285_p6 }
 0x35d   : > { %2177 = dma.done.wait (!%p1912_p2), %s1601_s23, 16  }
 0x35e   : > { %2179 = vsyncadd (!%p1912_p2), %s1601_s23, 4294967280  ;;  %p18_p3 = scmp.ge.s32.totalorder %s2268_s11, 4   ;;  %s2808_s27 = smov %s2186_s28 }
 0x35f   : > { %s2809_s28 = smov %s2190_s29  ;;  %s2810_s29 = smov %s2279_s14 }
 0x360   : > { %s2811_s30 = smov %s2268_s11  ;;  %20 = sbr.rel (!%p18_p3) target bundleno = 3 (0x3), region = 92 }
 0x367   :  { %1605 = vsyncpa [#allocation3], 1 }
 0x368   :  { %1607 = vsyncpa [#allocation3 + $0x1], 1 }

</bundles_post_ra>
